<compile_context>
chip_gen: v7x
topology: tpu7x:2x2x1
jax: 0.10.0
libtpu: 0.0.40
codegen_flags: <defaults>
</compile_context>

<pallas_src>
import jax
import jax.numpy as jnp
from jax.experimental import pallas as pl
from jax.experimental.pallas import tpu as pltpu


def _round_up(x: int, m: int) -> int:
    return ((x + m - 1) // m) * m


# ---------------------------------------------------------------------------
# Kernels
# ---------------------------------------------------------------------------
def _linear_kernel_2d(x_ref, w_ref, b_ref, o_ref):
    """Single-K-panel step: o = (x @ W + b), no accumulator needed.

    x_ref: (tm, Kp) f32 activation tile (cast to bf16 for the MXU)
    w_ref: (Kp, tn) bf16 weight tile (pre-transposed [K, N] layout)
    b_ref: (1,  tn) f32 bias tile (lane-dense)
    o_ref: (tm, tn) f32 output tile
    """
    acc = jnp.dot(
        x_ref[...].astype(jnp.bfloat16),
        w_ref[...],
        preferred_element_type=jnp.float32,
    )
    o_ref[...] = (acc + b_ref[...]).astype(o_ref.dtype)


def _linear_kernel_3d(x_ref, w_ref, b_ref, o_ref, acc_ref):
    """K-tiled step with a resident f32 accumulator (init at k==0, finalize at
    k==last)."""
    k = pl.program_id(2)

    @pl.when(k == 0)
    def _():
        acc_ref[...] = jnp.zeros_like(acc_ref)

    acc_ref[...] += jnp.dot(
        x_ref[...].astype(jnp.bfloat16),
        w_ref[...],
        preferred_element_type=jnp.float32,
    )

    @pl.when(k == pl.num_programs(2) - 1)
    def _():
        o_ref[...] = (acc_ref[...] + b_ref[...]).astype(o_ref.dtype)


# ---------------------------------------------------------------------------
# Tile selection / VMEM budgeting
# ---------------------------------------------------------------------------
def _select_tiles(M, K, N, tm_max, tn_max, tk_max):
    tm = min(tm_max, _round_up(M, 16))      # 16-row align (bf16 sublane pack)
    tn = min(tn_max, _round_up(N, 128))     # lane-dense output
    kp128 = _round_up(K, 128)
    if kp128 <= tk_max:
        return tm, tn, kp128, True          # whole K panel fits -> 2-D grid
    return tm, tn, tk_max, False


def _vmem_limit_bytes(tm, tn, tk, single_k, x_bytes, w_bytes, o_bytes):
    # Double-buffered inputs/outputs + (optional) f32 accumulator + headroom.
    buffered = 2 * (tm * tk * x_bytes + tk * tn * w_bytes
                    + tm * tn * o_bytes + tn * 4)
    acc = 0 if single_k else tm * tn * 4
    est = buffered + acc
    # Clamp: at least 32 MiB (cheap, always available), never above 56 MiB so
    # the same config stays inside v7x's 64 MiB physical VMEM.
    return int(min(max(est * 5 // 4 + (4 << 20), 32 << 20), 56 << 20))


# ---------------------------------------------------------------------------
# Parameter prep (one-time; hoist out of the per-call hot path in real use)
# ---------------------------------------------------------------------------
def prepare_linear_params(weight, bias, *, Np, Kp, param_dtype=jnp.bfloat16):
    """Transpose PyTorch [N, K] weight to [K, N], zero-pad to tile multiples,
    cast weight to bf16. Static parameters -> a one-time, jit-cacheable cost."""
    N, K = weight.shape
    w_kn = jnp.pad(weight, ((0, Np - N), (0, Kp - K))).T.astype(param_dtype)
    b_row = jnp.pad(bias, (0, Np - N)).reshape(1, Np).astype(jnp.float32)
    return w_kn, b_row


# ---------------------------------------------------------------------------
# pallas_call wrappers
# ---------------------------------------------------------------------------
def _linear_padded(x_p, w_kn, b_row, *, tm, tn, tk, single_k):
    Mp, Kp = x_p.shape
    _, Np = w_kn.shape
    out_dtype = x_p.dtype

    # Cost hint including panel re-streaming (x re-read Np/tn times, W re-read
    # Mp/tm times).
    cost = pl.CostEstimate(
        flops=2 * Mp * Np * Kp,
        transcendentals=0,
        bytes_accessed=(Mp * Kp * x_p.dtype.itemsize * (Np // tn)
                        + Kp * Np * w_kn.dtype.itemsize * (Mp // tm)
                        + Mp * Np * out_dtype.itemsize
                        + Np * 4),
    )
    vmem_limit = _vmem_limit_bytes(
        tm, tn, tk, single_k,
        x_bytes=x_p.dtype.itemsize,
        w_bytes=w_kn.dtype.itemsize,
        o_bytes=out_dtype.itemsize,
    )

    if single_k:
        grid = (Mp // tm, Np // tn)
        return pl.pallas_call(
            _linear_kernel_2d,
            out_shape=jax.ShapeDtypeStruct((Mp, Np), out_dtype),
            grid_spec=pltpu.PrefetchScalarGridSpec(
                num_scalar_prefetch=0,
                grid=grid,
                in_specs=[
                    pl.BlockSpec((tm, tk), lambda i, j: (i, 0)),   # x panel
                    pl.BlockSpec((tk, tn), lambda i, j: (0, j)),   # W [K,N]
                    pl.BlockSpec((1, tn), lambda i, j: (0, j)),    # bias
                ],
                out_specs=pl.BlockSpec((tm, tn), lambda i, j: (i, j)),
            ),
            compiler_params=pltpu.CompilerParams(
                dimension_semantics=("parallel", "parallel"),
                vmem_limit_bytes=vmem_limit,
            ),
            cost_estimate=cost,
        )(x_p, w_kn, b_row)

    grid = (Mp // tm, Np // tn, Kp // tk)
    return pl.pallas_call(
        _linear_kernel_3d,
        out_shape=jax.ShapeDtypeStruct((Mp, Np), out_dtype),
        grid_spec=pltpu.PrefetchScalarGridSpec(
            num_scalar_prefetch=0,
            grid=grid,
            in_specs=[
                pl.BlockSpec((tm, tk), lambda i, j, k: (i, k)),    # x tile
                pl.BlockSpec((tk, tn), lambda i, j, k: (k, j)),    # W [K,N]
                pl.BlockSpec((1, tn), lambda i, j, k: (0, j)),     # bias
            ],
            out_specs=pl.BlockSpec((tm, tn), lambda i, j, k: (i, j)),
            scratch_shapes=[pltpu.VMEM((tm, tn), jnp.float32)],
        ),
        compiler_params=pltpu.CompilerParams(
            dimension_semantics=("parallel", "parallel", "arbitrary"),
            vmem_limit_bytes=vmem_limit,
        ),
        cost_estimate=cost,
    )(x_p, w_kn, b_row)


def my_linear(x, weight, bias, *, tm_max=512, tn_max=512, tk_max=2048):
    """y = x @ weight.T + bias  (PyTorch nn.Linear forward semantics).

    x:      [M, K] float32
    weight: [N, K] float32 (PyTorch [out_features, in_features] layout)
    bias:   [N]    float32
    """
    M, K = x.shape
    N, K_w = weight.shape
    assert K == K_w, "weight inner dim must match x inner dim"

    tm, tn, tk, single_k = _select_tiles(M, K, N, tm_max, tn_max, tk_max)
    Mp = _round_up(M, tm)
    Np = _round_up(N, tn)
    Kp = tk if single_k else _round_up(K, tk)

    # Static-parameter prep (pad + transpose + bf16 cast). In a real model,
    # hoist this out of the per-step hot path; it is done here for a
    # self-contained example.
    w_kn, b_row = prepare_linear_params(weight, bias, Np=Np, Kp=Kp)

    x_p = (jnp.pad(x, ((0, Mp - M), (0, Kp - K)))
           if (Mp, Kp) != (M, K) else x)

    out_padded = _linear_padded(x_p, w_kn, b_row,
                                tm=tm, tn=tn, tk=tk, single_k=single_k)
    return out_padded[:M, :N]


if __name__ == "__main__":
    # Shapes from the module's example: x = FloatTensor(16, 10),
    # MyLinear(input_size=10, output_size=5).  At these tiny shapes the kernel
    # is launch-overhead bound; the tiling/bf16/VMEM work pays off at real
    # linear-layer sizes.
    M, K, N = 16, 10, 5
    key = jax.random.PRNGKey(0)
    kx, kw, kb = jax.random.split(key, 3)

    x = jax.random.normal(kx, (M, K), dtype=jnp.float32)
    # Deterministic synthetic parameters (PyTorch [out_features, in_features]).
    weight = jax.random.normal(kw, (N, K), dtype=jnp.float32) * 0.1
    bias = jax.random.normal(kb, (N,), dtype=jnp.float32) * 0.1

    y = my_linear(x, weight, bias)
    y = jax.block_until_ready(y)

    # Correctness check vs plain-JAX reference of nn.Linear semantics.
    # Tolerance loosened because the MXU operands are bf16 (f32 accumulation).
    y_ref = x @ weight.T + bias
    assert y.shape == (M, N)
    assert jnp.allclose(y, y_ref, atol=1e-2, rtol=1e-2), float(
        jnp.max(jnp.abs(y - y_ref)))

    print("KERNEL_OK")
</pallas_src>

<mosaic_0001>
module attributes {stable_mosaic.version = 11 : i64} {
  func.func @_linear_kernel_2d(%arg0: i32, %arg1: i32, %arg2: memref<16x128xf32, #tpu.memory_space<vmem>>, %arg3: memref<128x128xbf16, #tpu.memory_space<vmem>>, %arg4: memref<1x128xf32, #tpu.memory_space<vmem>>, %arg5: memref<16x128xf32, #tpu.memory_space<vmem>>) attributes {dimension_semantics = [#tpu.dimension_semantics<parallel>, #tpu.dimension_semantics<parallel>], iteration_bounds = array<i64: 1, 1>, scalar_prefetch = 0 : i64, scratch_operands = 0 : i64, tpu.core_type = #tpu.core_type<tc>, window_params = [{transform_indices = @transform_0, window_bounds = array<i64: 16, 128>}, {transform_indices = @transform_1, window_bounds = array<i64: 128, 128>}, {transform_indices = @transform_2, window_bounds = array<i64: 1, 128>}, {transform_indices = @transform_3, window_bounds = array<i64: 16, 128>}]} {
    %c0 = arith.constant 0 : index
    %c0_0 = arith.constant 0 : index
    %0 = vector.load %arg2[%c0, %c0_0] : memref<16x128xf32, #tpu.memory_space<vmem>>, vector<16x128xf32>
    %1 = arith.truncf %0 : vector<16x128xf32> to vector<16x128xbf16>
    %c0_1 = arith.constant 0 : index
    %c0_2 = arith.constant 0 : index
    %2 = vector.load %arg3[%c0_1, %c0_2] : memref<128x128xbf16, #tpu.memory_space<vmem>>, vector<128x128xbf16>
    %cst = arith.constant dense<0.000000e+00> : vector<16x128xf32>
    %3 = tpu.matmul %1, %2, %cst {dimension_numbers = #tpu.dot_dimension_numbers<[1], [0], [0], [1], [0, 0, 1, 1], [], []>} : vector<16x128xbf16>, vector<128x128xbf16>, vector<16x128xf32> -> vector<16x128xf32>
    %c0_3 = arith.constant 0 : index
    %c0_4 = arith.constant 0 : index
    %4 = vector.load %arg4[%c0_3, %c0_4] : memref<1x128xf32, #tpu.memory_space<vmem>>, vector<1x128xf32>
    %5 = vector.broadcast %4 : vector<1x128xf32> to vector<16x128xf32>
    %6 = arith.addf %3, %5 : vector<16x128xf32>
    %c0_5 = arith.constant 0 : index
    %c0_6 = arith.constant 0 : index
    %7 = vector.load %arg5[%c0_5, %c0_6] : memref<16x128xf32, #tpu.memory_space<vmem>>, vector<16x128xf32>
    tpu.vector_store %arg5[%c0_5, %c0_6], %6 {strides = array<i32>} : memref<16x128xf32, #tpu.memory_space<vmem>>, vector<16x128xf32>,
    return
  }
  func.func @transform_0(%arg0: i32, %arg1: i32) -> (i32, i32) {
    %c0_i32 = arith.constant 0 : i32
    %c0_i32_0 = arith.constant 0 : i32
    return %arg0, %c0_i32 : i32, i32
  }
  func.func @transform_1(%arg0: i32, %arg1: i32) -> (i32, i32) {
    %c0_i32 = arith.constant 0 : i32
    %c0_i32_0 = arith.constant 0 : i32
    return %c0_i32, %arg1 : i32, i32
  }
  func.func @transform_2(%arg0: i32, %arg1: i32) -> (i32, i32) {
    %c0_i32 = arith.constant 0 : i32
    %c0_i32_0 = arith.constant 0 : i32
    return %c0_i32, %arg1 : i32, i32
  }
  func.func @transform_3(%arg0: i32, %arg1: i32) -> (i32, i32) {
    %c0_i32 = arith.constant 0 : i32
    return %arg0, %arg1 : i32, i32
  }
}

</mosaic_0001>

<bundles_post_ra>
// kernel: tpu_custom_call.1
= control target key start
LH: loop header
LB: loop body
LE: loop exit
PB: predicated region body
PF: predicated region fallthrough
CT: control target
= control target key end

     0   :  { %8 = vsyncpa [#allocation3], 0  ;;  %s380_s0 = inlined_call_operand.hbm [shape: f32[16,128], index: 0, kind: input, shape index: {}]   ;;  %s381_s1 = inlined_call_operand.hbm [shape: bf16[128,128], index: 1, kind: input, shape index: {}]   ;;  %s382_s2 = inlined_call_operand.vmem [shape: f32[1,128], index: 2, kind: input, shape index: {}]   ;;  %s383_s3 = inlined_call_operand.hbm [shape: f32[16,128], index: 3, kind: output, shape index: {}]  }
   0x1   :  { %9 = vsyncpa [#allocation6], 0 }
   0x2   :  { %10 = vsyncpa [#allocation4], 0  ;;  %s306_s12 = smov [#allocation2]   ;;  %s234_s16 = scalar_lea.hbm %s380_s0, 256 }
   0x3   :  { %s16_s13 = sshll.u32 %s306_s12, 4  ;;  %p235_p0 = scmp.ne.s32.totalorder %s380_s0, %s234_s16  ;;  %s17_s13 = int_to_ptr.vmem [resolvable:$true] %s16_s13 }
   0x4   :  { %p238_p1 = scmp.lt.u32.totalorder %s234_s16, %s380_s0 }
   0x6   :  { %p240_p2 = pnand %p238_p1, %p235_p0 }
   0x8   :  { %243 = shalt.err (!%p240_p2)
}
   0x9   :  { %s244_s21 = scalar_lea.vmem %s17_s13, 256  ;;  %p249_p4 = scmp.lt.s32.totalorder %s17_s13, %s17_s13 }
   0xa   :  { %p245_p3 = scmp.ne.s32.totalorder %s17_s13, %s244_s21  ;;  %p250_p5 = scmp.lt.s32.totalorder %s244_s21, %s244_s21 }
   0xc   :  { %p251_p6 = por %p250_p5, %p249_p4 }
   0xe   :  { %p252_p7 = pnand %p251_p6, %p245_p3 }
  0x10   :  { %255 = shalt.err (!%p252_p7)
}
  0x11   :  { %s307_s22 = smov 128   ;;  %s308_s23 = smov 8  }
  0x12   :  { %22 = dma.hbm_to_vmem [thread:$0]  %s380_s0, 256, %s17_s13, [#allocation3], %s307_s22, %s307_s22, %s308_s23  }
  0x13   :  { %s309_s26 = smov [#allocation5]   ;;  %s256_s30 = scalar_lea.hbm %s381_s1, 1024 }
  0x14   :  { %s28_s27 = sshll.u32 %s309_s26, 4  ;;  %p257_p8 = scmp.ne.s32.totalorder %s381_s1, %s256_s30  ;;  %s29_s27 = int_to_ptr.vmem [resolvable:$true] %s28_s27 }
  0x15   :  { %p260_p9 = scmp.lt.u32.totalorder %s256_s30, %s381_s1 }
  0x17   :  { %p262_p10 = pnand %p260_p9, %p257_p8 }
  0x19   :  { %265 = shalt.err (!%p262_p10)
}
  0x1a   :  { %s266_s8 = scalar_lea.vmem %s29_s27, 1024  ;;  %p271_p12 = scmp.lt.s32.totalorder %s29_s27, %s29_s27 }
  0x1b   :  { %p267_p11 = scmp.ne.s32.totalorder %s29_s27, %s266_s8  ;;  %p272_p13 = scmp.lt.s32.totalorder %s266_s8, %s266_s8 }
  0x1d   :  { %p273_p0 = por %p272_p13, %p271_p12 }
  0x1f   :  { %p274_p1 = pnand %p273_p0, %p267_p11 }
  0x21   :  { %277 = shalt.err (!%p274_p1)
}
  0x22   :  { %s310_s0 = smov 64   ;;  %s311_s9 = smov 4  }
  0x23   :  { %34 = dma.hbm_to_vmem [thread:$0]  %s381_s1, 1024, %s29_s27, [#allocation6], %s310_s0, %s310_s0, %s311_s9  }
  0x24   :  { %300 = dma.done.wait [#allocation3], 256  }
  0x25   :  { %301 = vsyncadd [#allocation3], 4294967040 }
  0x26   :  { %302 = dma.done.wait [#allocation6], 1024  }
  0x27   :  { %303 = vsyncadd [#allocation6], 4294966272  ;;  %v312_v0 = vmov 0.0   ;;  %vm313_vm0 = vmmov 0   ;;  %v226_v1 = vld [vmem:[#allocation5] sm:$0xff]   ;;  %v227_v2 = vld [vmem:[#allocation5 + $0x8] sm:$0xff]  }
  0x28   :  { %197 = vmatprep.subr.bf16.mxu0 %v312_v0  ;;  %213 = vmatprep.mubr.msk.bf16.mxu0 %vm313_vm0, %v312_v0  ;;  %v228_v3 = vld [vmem:[#allocation5 + $0x10] sm:$0xff]   ;;  %v229_v4 = vld [vmem:[#allocation5 + $0x18] sm:$0xff]   ;;  %v230_v5 = vld [vmem:[#allocation5 + $0x20] sm:$0xff]   ;;  %s314_s13 = smov [#allocation7]  }
  0x29   :  { %198 = vmatpush3.bf16.msra.mxu0 %v226_v1  ;;  %v231_v6 = vld [vmem:[#allocation5 + $0x28] sm:$0xff]   ;;  %v232_v7 = vld [vmem:[#allocation5 + $0x30] sm:$0xff]   ;;  %v233_v8 = vld [vmem:[#allocation5 + $0x38] sm:$0xff]   ;;  %s166_s14 = sshll.u32 %s314_s13, 4  ;;  %s167_s14 = int_to_ptr.vmem [resolvable:$true] %s166_s14 }
  0x2a   :  { %199 = vmatprep.subr.bf16.mxu0 %v312_v0  ;;  %v44_v9 = vld [vmem:[#allocation2] sm:$0xff]  ;;  %v45_v10 = vld [vmem:[#allocation2 + $0x8] sm:$0xff]  ;;  %s278_s15 = scalar_lea.vmem %s167_s14, 256  ;;  %p283_p3 = scmp.lt.s32.totalorder %s167_s14, %s167_s14 }
  0x2b   :  { %v46_v11 = vpack.c.bf16 %v45_v10, %v44_v9  ;;  %v179_v12 = vld [vmem:[%s382_s2] ss:$0 sm:$0xff]  ;;  %p279_p2 = scmp.ne.s32.totalorder %s167_s14, %s278_s15  ;;  %p284_p4 = scmp.lt.s32.totalorder %s278_s15, %s278_s15 }
  0x2d   :  { %200 = vmatpush3.bf16.msra.mxu0 %v227_v2  ;;  %p285_p5 = por %p284_p4, %p283_p3 }
  0x2e   :  { %201 = vmatprep.subr.bf16.mxu0 %v312_v0 }
  0x2f   :  { %p286_p6 = pnand %p285_p5, %p279_p2 }
  0x31   :  { %202 = vmatpush3.bf16.msra.mxu0 %v228_v3 }
  0x32   :  { %203 = vmatprep.subr.bf16.mxu0 %v312_v0 }
  0x35   :  { %204 = vmatpush3.bf16.msra.mxu0 %v229_v4 }
  0x36   :  { %205 = vmatprep.subr.bf16.mxu0 %v312_v0 }
  0x39   :  { %206 = vmatpush3.bf16.msra.mxu0 %v230_v5 }
  0x3a   :  { %207 = vmatprep.subr.bf16.mxu0 %v312_v0 }
  0x3d   :  { %208 = vmatpush3.bf16.msra.mxu0 %v231_v6 }
  0x3e   :  { %209 = vmatprep.subr.bf16.mxu0 %v312_v0 }
  0x41   :  { %210 = vmatpush3.bf16.msra.mxu0 %v232_v7 }
  0x42   :  { %211 = vmatprep.subr.bf16.mxu0 %v312_v0 }
  0x45   :  { %212 = vmatpush3.bf16.msra.mxu0 %v233_v8 }
  0x48   :  { %214 = vmatmul.mubr.bf16.vlgmr.msra.gmra.mrb[0].mxu0 %v46_v11 }
 0x11b   :  { %v152_v13 = vpop.f32.mrb[0].mxu0 }
 0x11c   :  { %v153_v14 = vadd.f32 %v179_v12, %v152_v13  ;;  %v215_v15 = vpop.f32.mrb[1].mxu0 }
 0x11d   :  { %v155_v16 = vpop.f32.mrb[2].mxu0 }
 0x11e   :  { %159 = vst [vmem:[#allocation7] sm:$0xff] %v153_v14  ;;  %v156_v17 = vadd.f32 %v179_v12, %v155_v16  ;;  %v216_v18 = vpop.f32.mrb[3].mxu0 }
 0x120   :  { %160 = vst [vmem:[#allocation7 + $0x8] sm:$0xff] %v156_v17 }
 0x121   :  { %289 = shalt.err (!%p286_p6)
}
 0x122   :  { %s290_s17 = scalar_lea.hbm %s383_s3, 256 }
 0x123   :  { %p291_p7 = scmp.ne.s32.totalorder %s383_s3, %s290_s17  ;;  %p294_p8 = scmp.lt.u32.totalorder %s290_s17, %s383_s3 }
 0x125   :  { %p296_p9 = pnand %p294_p8, %p291_p7 }
 0x127   :  { %299 = shalt.err (!%p296_p9)
}
 0x128   :  { %172 = dma.vmem_to_hbm [thread:$0]  %s167_s14, 256, %s383_s3, [#allocation4], %s307_s22, %s307_s22, %s308_s23  }
 0x129   :  { %304 = dma.done.wait [#allocation4], 256  }
 0x12a   :  { %305 = vsyncadd [#allocation4], 4294967040 }
 0x12b   :  { %176 = vsyncpa [#allocation3], 1 }
 0x12c   :  { %177 = vsyncpa [#allocation6], 1 }
 0x12d   :  { %178 = vsyncpa [#allocation4], 1 }

</bundles_post_ra>
